<compile_context>
chip_gen: v5e
topology: v5e:2x2
jax: 0.10.0
libtpu: 0.0.40
codegen_flags: <defaults>
</compile_context>

<pallas_src>
import jax
import jax.numpy as jnp
from jax.experimental import pallas as pl
from jax.experimental.pallas import tpu as pltpu

LATENT_DIM = 10
DATA_DIM = 4
HIDDEN = (32, 32)  # archi.couches_gene


# ----------------------------- kernel -------------------------------------- #

def _generator_kernel(zt_ref, w0_ref, b0_ref, w12_ref, b12_ref, out_ref):
    # zt_ref : [LATENT_DIM, TILE_B]   (batch on lanes -> lane-dense vld/vst)
    # w0_ref : [H0, LATENT_DIM]       (PyTorch-native [out, in], VMEM-resident)
    # b0_ref : [H0, 1]
    # w12_ref: [DATA_DIM, H0]         (fused W2 @ W1; no activation between them)
    # b12_ref: [DATA_DIM, 1]          (fused W2 @ b1 + b2)
    # out_ref: [DATA_DIM, TILE_B]
    zt = zt_ref[...]
    # Linear(latent -> h0) + ReLU (the only activation in the module)
    h = jnp.dot(w0_ref[...], zt, preferred_element_type=jnp.float32) + b0_ref[...]
    h = jnp.maximum(h, 0.0)
    # Fused Linear(h0 -> h1) o Linear(h1 -> data_dim)
    out = jnp.dot(w12_ref[...], h, preferred_element_type=jnp.float32) + b12_ref[...]
    out_ref[...] = out.astype(out_ref.dtype)


# --------------------------- tiling helpers --------------------------------- #

def _device_kind():
    try:
        return jax.devices()[0].device_kind.lower()
    except Exception:  # pragma: no cover - CPU/interpret fallback
        return ""


def _tile_lanes_target(kind):
    # Lanes (batch columns) per grid step so that per-step DMA time exceeds the
    # ~0.35us fixed pipeline cost on each generation's HBM bandwidth.
    if ("v5 lite" in kind) or ("v5e" in kind) or ("v5lite" in kind):
        return 8192            # ~0.8 TB/s HBM, 16 MiB default scoped VMEM
    if "v7" in kind:
        return 65536           # ~3.2 TB/s HBM (still ~13 MiB double-buffered)
    return 32768               # v6e (~1.4 TB/s) and default


def _min_grid_steps(kind):
    # v7x has 2 TensorCores per chip; need >= 2 grid steps for "parallel" to help.
    return 2 if "v7" in kind else 1


def _choose_tiling(batch, kind):
    """Return (tile_b, padded, steps) with tile_b a multiple of 128 and minimal
    tail padding for the chosen number of steps."""
    target_cols = max(1, _tile_lanes_target(kind) // 128)
    cols = pl.cdiv(batch, 128)                       # 128-lane groups needed
    steps = max(1, pl.cdiv(cols, target_cols))       # enough steps to hit target
    steps = max(steps, min(_min_grid_steps(kind), cols))
    tile_b = pl.cdiv(cols, steps) * 128              # round up -> covers batch
    padded = steps * tile_b
    return tile_b, padded, steps


# --------------------------- forward wrappers ------------------------------- #

def _fuse_params(params):
    """Algebraic fusion of the activation-free tail: out = W2@(W1@h + b1) + b2."""
    (w0, b0), (w1, b1), (w2, b2) = params
    w12 = w2 @ w1                                    # [DATA_DIM, H0]
    b12 = (w2 @ b1 + b2).reshape(DATA_DIM, 1)
    b0c = b0.reshape(HIDDEN[0], 1)
    return w0, b0c, w12, b12


def generator_forward_t(zt, params, *, tile_b=None):
    """Pallas path in transposed layout (no extra HBM passes).

    zt: [LATENT_DIM, batch] f32.  Returns out^T: [DATA_DIM, batch] f32.
    """
    latent, batch = zt.shape
    assert latent == LATENT_DIM
    w0, b0c, w12, b12 = _fuse_params(params)

    kind = _device_kind()
    if tile_b is None:
        tile_b, padded, steps = _choose_tiling(batch, kind)
    else:
        tile_b = max(128, (int(tile_b) // 128) * 128)
        steps = pl.cdiv(batch, tile_b)
        padded = steps * tile_b

    # Pad the lane axis to a tile multiple.  jnp.pad (single copy at worst) +
    # allow_input_fusion lets XLA fuse the pad/transpose into the operand.
    zt_p = zt if padded == batch else jnp.pad(zt, ((0, 0), (0, padded - batch)))

    out_t = pl.pallas_call(
        _generator_kernel,
        out_shape=jax.ShapeDtypeStruct((DATA_DIM, padded), jnp.float32),
        grid_spec=pltpu.PrefetchScalarGridSpec(
            num_scalar_prefetch=0,
            grid=(steps,),
            in_specs=[
                pl.BlockSpec((LATENT_DIM, tile_b), lambda i: (0, i)),     # z^T tile
                pl.BlockSpec((HIDDEN[0], LATENT_DIM), lambda i: (0, 0)),  # W0 (resident)
                pl.BlockSpec((HIDDEN[0], 1), lambda i: (0, 0)),           # b0
                pl.BlockSpec((DATA_DIM, HIDDEN[0]), lambda i: (0, 0)),    # W12
                pl.BlockSpec((DATA_DIM, 1), lambda i: (0, 0)),            # b12
            ],
            out_specs=pl.BlockSpec((DATA_DIM, tile_b), lambda i: (0, i)),
        ),
        compiler_params=pltpu.CompilerParams(
            dimension_semantics=("parallel",),   # shards batch tiles across TCs
            allow_input_fusion=[True, False, False, False, False],
        ),
    )(zt_p, w0, b0c, w12, b12)

    return out_t if padded == batch else out_t[:, :batch]


def generator_forward(z, params, *, tile_b=None, min_pallas_batch=512):
    """PyTorch-layout convenience wrapper: z [batch, LATENT_DIM] -> [batch, DATA_DIM]."""
    batch = z.shape[0]
    if batch < min_pallas_batch:
        # Small-batch fast path: pad/transpose/launch overhead dominates and XLA
        # fuses this tiny MLP fine.
        return reference_forward(z, params)
    return generator_forward_t(z.T, params, tile_b=tile_b).T


# --------------------------- params & reference ------------------------------ #

def init_params(key):
    """PyTorch-layout Linear init: W [out, in], b [out], U[-1/sqrt(in), 1/sqrt(in)]."""
    dims = [LATENT_DIM, HIDDEN[0], HIDDEN[1], DATA_DIM]
    params = []
    for i in range(3):
        fan_in, fan_out = dims[i], dims[i + 1]
        key, kw, kb = jax.random.split(key, 3)
        bound = 1.0 / jnp.sqrt(fan_in)
        w = jax.random.uniform(kw, (fan_out, fan_in), jnp.float32, -bound, bound)
        b = jax.random.uniform(kb, (fan_out,), jnp.float32, -bound, bound)
        params.append((w, b))
    return params


def reference_forward(z, params):
    """Unfused reference matching the PyTorch nn.Sequential exactly."""
    (w0, b0), (w1, b1), (w2, b2) = params
    h = jnp.maximum(z @ w0.T + b0, 0.0)
    h = h @ w1.T + b1
    return h @ w2.T + b2


if __name__ == "__main__":
    key = jax.random.PRNGKey(0)
    key_z, key_p, key_z2 = jax.random.split(key, 3)

    params = init_params(key_p)

    # Small demo batch -- force the Pallas path (default wrapper would fall back
    # to the pure-jnp fast path below min_pallas_batch).
    batch = 8
    z = jax.random.normal(key_z, (batch, LATENT_DIM), dtype=jnp.float32)
    out = generator_forward(z, params, min_pallas_batch=0)
    out = jax.block_until_ready(out)
    ref = reference_forward(z, params)
    assert out.shape == (batch, DATA_DIM)
    assert jnp.allclose(out, ref, atol=1e-4, rtol=1e-4)

    # Ragged multi-tile batch through the transposed (copy-free) API.
    batch2 = 1000
    z2 = jax.random.normal(key_z2, (batch2, LATENT_DIM), dtype=jnp.float32)
    out2_t = generator_forward_t(z2.T, params)          # [DATA_DIM, batch2]
    out2_t = jax.block_until_ready(out2_t)
    ref2 = reference_forward(z2, params)
    assert out2_t.shape == (DATA_DIM, batch2)
    assert jnp.allclose(out2_t.T, ref2, atol=1e-4, rtol=1e-4)

    print("KERNEL_OK")
</pallas_src>

<mosaic_0001>
module attributes {stable_mosaic.version = 11 : i64} {
  func.func @_generator_kernel(%arg0: i32, %arg1: memref<10x128xf32, #tpu.memory_space<vmem>>, %arg2: memref<32x10xf32, #tpu.memory_space<vmem>>, %arg3: memref<32x1xf32, #tpu.memory_space<vmem>>, %arg4: memref<4x32xf32, #tpu.memory_space<vmem>>, %arg5: memref<4x1xf32, #tpu.memory_space<vmem>>, %arg6: memref<4x128xf32, #tpu.memory_space<vmem>>) attributes {dimension_semantics = [#tpu.dimension_semantics<parallel>], iteration_bounds = array<i64: 1>, scalar_prefetch = 0 : i64, scratch_operands = 0 : i64, tpu.core_type = #tpu.core_type<tc>, window_params = [{transform_indices = @transform_0, window_bounds = array<i64: 10, 128>}, {pipeline_mode = #tpu.pipeline_mode<synchronous>, transform_indices = @transform_1, window_bounds = array<i64: 32, 10>}, {pipeline_mode = #tpu.pipeline_mode<synchronous>, transform_indices = @transform_2, window_bounds = array<i64: 32, 1>}, {pipeline_mode = #tpu.pipeline_mode<synchronous>, transform_indices = @transform_3, window_bounds = array<i64: 4, 32>}, {pipeline_mode = #tpu.pipeline_mode<synchronous>, transform_indices = @transform_4, window_bounds = array<i64: 4, 1>}, {transform_indices = @transform_5, window_bounds = array<i64: 4, 128>}]} {
    %c0 = arith.constant 0 : index
    %c0_0 = arith.constant 0 : index
    %0 = vector.load %arg1[%c0, %c0_0] : memref<10x128xf32, #tpu.memory_space<vmem>>, vector<10x128xf32>
    %c0_1 = arith.constant 0 : index
    %c0_2 = arith.constant 0 : index
    %1 = vector.load %arg2[%c0_1, %c0_2] : memref<32x10xf32, #tpu.memory_space<vmem>>, vector<32x10xf32>
    %cst = arith.constant dense<0.000000e+00> : vector<32x128xf32>
    %2 = tpu.matmul %1, %0, %cst {dimension_numbers = #tpu.dot_dimension_numbers<[1], [0], [0], [1], [0, 0, 1, 1], [], []>} : vector<32x10xf32>, vector<10x128xf32>, vector<32x128xf32> -> vector<32x128xf32>
    %c0_3 = arith.constant 0 : index
    %c0_4 = arith.constant 0 : index
    %3 = vector.load %arg3[%c0_3, %c0_4] : memref<32x1xf32, #tpu.memory_space<vmem>>, vector<32x1xf32>
    %4 = vector.broadcast %3 : vector<32x1xf32> to vector<32x128xf32>
    %5 = arith.addf %2, %4 : vector<32x128xf32>
    %cst_5 = arith.constant 0.000000e+00 : f32
    %6 = vector.broadcast %cst_5 : f32 to vector<32x128xf32>
    %7 = arith.maximumf %5, %6 : vector<32x128xf32>
    %c0_6 = arith.constant 0 : index
    %c0_7 = arith.constant 0 : index
    %8 = vector.load %arg4[%c0_6, %c0_7] : memref<4x32xf32, #tpu.memory_space<vmem>>, vector<4x32xf32>
    %cst_8 = arith.constant dense<0.000000e+00> : vector<4x128xf32>
    %9 = tpu.matmul %8, %7, %cst_8 {dimension_numbers = #tpu.dot_dimension_numbers<[1], [0], [0], [1], [0, 0, 1, 1], [], []>} : vector<4x32xf32>, vector<32x128xf32>, vector<4x128xf32> -> vector<4x128xf32>
    %c0_9 = arith.constant 0 : index
    %c0_10 = arith.constant 0 : index
    %10 = vector.load %arg5[%c0_9, %c0_10] : memref<4x1xf32, #tpu.memory_space<vmem>>, vector<4x1xf32>
    %11 = vector.broadcast %10 : vector<4x1xf32> to vector<4x128xf32>
    %12 = arith.addf %9, %11 : vector<4x128xf32>
    %c0_11 = arith.constant 0 : index
    %c0_12 = arith.constant 0 : index
    %13 = vector.load %arg6[%c0_11, %c0_12] : memref<4x128xf32, #tpu.memory_space<vmem>>, vector<4x128xf32>
    tpu.vector_store %arg6[%c0_11, %c0_12], %12 {strides = array<i32>} : memref<4x128xf32, #tpu.memory_space<vmem>>, vector<4x128xf32>,
    return
  }
  func.func @transform_0(%arg0: i32) -> (i32, i32) {
    %c0_i32 = arith.constant 0 : i32
    %c0_i32_0 = arith.constant 0 : i32
    return %c0_i32, %arg0 : i32, i32
  }
  func.func @transform_1(%arg0: i32) -> (i32, i32) {
    %c0_i32 = arith.constant 0 : i32
    %c0_i32_0 = arith.constant 0 : i32
    %c0_i32_1 = arith.constant 0 : i32
    return %c0_i32, %c0_i32_0 : i32, i32
  }
  func.func @transform_2(%arg0: i32) -> (i32, i32) {
    %c0_i32 = arith.constant 0 : i32
    %c0_i32_0 = arith.constant 0 : i32
    %c0_i32_1 = arith.constant 0 : i32
    return %c0_i32, %c0_i32_0 : i32, i32
  }
  func.func @transform_3(%arg0: i32) -> (i32, i32) {
    %c0_i32 = arith.constant 0 : i32
    %c0_i32_0 = arith.constant 0 : i32
    %c0_i32_1 = arith.constant 0 : i32
    return %c0_i32, %c0_i32_0 : i32, i32
  }
  func.func @transform_4(%arg0: i32) -> (i32, i32) {
    %c0_i32 = arith.constant 0 : i32
    %c0_i32_0 = arith.constant 0 : i32
    %c0_i32_1 = arith.constant 0 : i32
    return %c0_i32, %c0_i32_0 : i32, i32
  }
  func.func @transform_5(%arg0: i32) -> (i32, i32) {
    %c0_i32 = arith.constant 0 : i32
    %c0_i32_0 = arith.constant 0 : i32
    return %c0_i32, %arg0 : i32, i32
  }
}

</mosaic_0001>

<bundles_post_ra>
// kernel: tpu_custom_call.1
= control target key start
LH: loop header
LB: loop body
LE: loop exit
PB: predicated region body
PF: predicated region fallthrough
CT: control target
= control target key end

     0   :  { %vm64_vm0 = vcmask 1041408   ;;  %vm51_vm1 = vcmask 80896   ;;  %v190_v4 = vmov 0   ;;  %s265_s0 = inlined_call_operand.vmem [shape: f32[10,128], index: 0, kind: input, shape index: {}]   ;;  %s266_s1 = inlined_call_operand.vmem [shape: f32[32,10], index: 1, kind: input, shape index: {}]   ;;  %s267_s2 = inlined_call_operand.vmem [shape: f32[32,1], index: 2, kind: input, shape index: {}]   ;;  %s268_s3 = inlined_call_operand.vmem [shape: f32[4,32], index: 3, kind: input, shape index: {}]   ;;  %s269_s4 = inlined_call_operand.vmem [shape: f32[4,1], index: 4, kind: input, shape index: {}]   ;;  %s270_s5 = inlined_call_operand.hbm [shape: f32[4,128], index: 5, kind: output, shape index: {}]  }
   0x1   :  { %v22_v0 = vld [vmem:[%s265_s0 + $0x8] sm:$0x3]  ;;  %v21_v1 = vld [vmem:[%s265_s0] sm:$0xff]  ;;  %v26_v3 = vld [vmem:[%s266_s1 + $0x18] sm:$0xff]  ;;  %161 = vset.pattern.permute.xlu0 %v190_v4 }
   0x2   :  { %155 = vmatpush.msk.msra.mxu2 %vm64_vm0, %v22_v0  ;;  %156 = vmatpush.msk.msra.mxu3 %vm64_vm0, %v22_v0  ;;  %v24_v2 = vld [vmem:[%s266_s1 + $0x8] sm:$0xff]  ;;  %v30_v5 = vld [vmem:[%s267_s2 + $0x18] sm:$0xff]  ;;  %v23_v6 = vld [vmem:[%s266_s1] sm:$0xff] }
   0x3   :  { %149 = vmatpush.msk.msra.mxu0 %vm64_vm0, %v22_v0 }
   0x4   :  { %157 = vmatpush.msra.mxu2 %v21_v1  ;;  %158 = vmatpush.msra.mxu3 %v21_v1 }
   0x5   :  { %10 = vsyncpa [#allocation3], 0  ;;  %151 = vmatmul.msk.f32.vlgmr.msra.gmra.mxu2 %vm51_vm1, %v24_v2  ;;  %153 = vmatmul.msk.f32.vlgmr.msra.gmra.mxu3 %vm51_vm1, %v26_v3  ;;  %v28_v7 = vld [vmem:[%s267_s2 + $0x8] sm:$0xff]  ;;  %v25_v8 = vld [vmem:[%s266_s1 + $0x10] sm:$0xff]  ;;  %vm108_vm2 = vcmask 261120   ;;  %s140_s17 = sshll.u32 %s270_s5, 4  ;;  %s141_s17 = int_to_ptr.hbm [resolvable:$true] %s140_s17 }
   0x6   :  { %48 = vperm.xlu0 %161, %v30_v5   ;;  %83 = vmatpush.msra.mxu0 %v21_v1  ;;  %v29_v9 = vld [vmem:[%s267_s2 + $0x10] sm:$0xff]  ;;  %v27_v10 = vld [vmem:[%s267_s2] sm:$0xff] }
   0x7   :  { %150 = vmatmul.msk.f32.vlgmr.msra.gmra.mxu0 %vm51_vm1, %v23_v6  ;;  %162 = vset.pattern.permute.xlu1 %v190_v4  ;;  %v102_v11 = vld [vmem:[%s269_s4] sm:$0xf]  ;;  %s191_s4 = smov [#allocation2]  }
   0x8   :  { %38 = vperm.xlu1 %162, %v28_v7   ;;  %163 = vset.pattern.permute.xlu2 %v190_v4  ;;  %v101_v28 = vld [vmem:[%s268_s3] sm:$0xf]  ;;  %s138_s14 = sshll.u32 %s191_s4, 4  ;;  %s139_s14 = int_to_ptr.vmem [resolvable:$true] %s138_s14 }
   0x9   :  { %105 = vperm.xlu2 %163, %v102_v11  }
   0xd   :  { %152 = vmatmul.msk.f32.gmra.mxu2 %vm51_vm1, %v25_v8 }
   0xe   :  { %43 = vperm.xlu0 %161, %v29_v9  }
  0x10   :  { %33 = vperm.xlu1 %162, %v27_v10  }
  0x63   :  { %v106_v29 = vpop.permute.xlu2 %105 }
  0x78   :  { %v49_v12 = vpop.permute.xlu0 %48 }
  0x7a   :  { %v39_v13 = vpop.permute.xlu1 %38 }
  0x80   :  { %v44_v18 = vpop.permute.xlu0 %43 }
  0x82   :  { %v34_v19 = vpop.permute.xlu1 %33 }
  0x84   :  { %v85_v20 = vpop.f32.mrf.mxu0 }
  0x85   :  { %v86_v24 = vadd.f32 %v85_v20, %v34_v19 }
  0x87   :  { %v97_v27 = vmax.f32 %v86_v24, 0.0 }
  0x88   :  { %v88_v14 = vpop.f32.mrf.mxu2  ;;  %v94_v15 = vpop.f32.mrf.mxu3 }
  0x89   :  { %v95_v16 = vadd.f32 %v94_v15, %v49_v12  ;;  %v89_v22 = vadd.f32 %v88_v14, %v39_v13 }
  0x8b   :  { %v100_v17 = vmax.f32 %v95_v16, 0.0  ;;  %v98_v26 = vmax.f32 %v89_v22, 0.0 }
  0x8d   :  { %124 = vmatpush.msra.mxu1 %v100_v17 }
  0x90   :  { %v91_v21 = vpop.f32.mrf.mxu2 }
  0x91   :  { %v92_v23 = vadd.f32 %v91_v21, %v44_v18 }
  0x93   :  { %v99_v25 = vmax.f32 %v92_v23, 0.0 }
  0x95   :  { %125 = vmatpush.msra.mxu1 %v99_v25 }
  0x97   :  { %126 = vmatpush.msra.mxu1 %v98_v26 }
  0x99   :  { %127 = vmatpush.msra.mxu1 %v97_v27 }
  0x9a   :  { %154 = vmatmul.msk.f32.vlgmr.msra.gmra.mxu1 %vm108_vm2, %v101_v28 }
 0x117   :  { %v129_v30 = vpop.f32.mrf.mxu1 }
 0x118   :  { %v130_v31 = vadd.f32 %v129_v30, %v106_v29 }
 0x11a   :  { %132 = vst [vmem:[#allocation2] sm:$0xf] %v130_v31 }
 0x11b   :  { %143 = dma.vmem_to_hbm [thread:$0]  %s139_s14, 64, %s141_s17, [#allocation3]  }
 0x11c   :  { %188 = dma.done.wait [#allocation3], 64  }
 0x11d   :  { %189 = vsyncadd [#allocation3], 4294967232 }
 0x11e   :  { %148 = vsyncpa [#allocation3], 1 }

</bundles_post_ra>
